<compile_context>
chip_gen: v7x
topology: tpu7x:2x2x1
jax: 0.10.0
libtpu: 0.0.40
codegen_flags: <defaults>
</compile_context>

<pallas_src>
import jax
import jax.numpy as jnp
from jax import lax
from jax.experimental import pallas as pl
from jax.experimental.pallas import tpu as pltpu

_ALIGN = 128  # row-tile alignment: keeps x blocks sublane-aligned and the
              # lane-dense (1, tm) output block 128-lane aligned.


def _mlp_kernel(x_ref, w1_ref, b1_ref, w2_ref, b2_ref, w3_ref, b3_ref, o_ref):
    """Fused MLP tile: (TM, dim) f32 rows -> (1, TM) f32 outputs.

    x_ref : (TM, dim)   f32 (cast to the MXU dtype in-kernel)
    w1_ref: (dim, 128)  compute dtype (bf16 or f32)
    b1_ref: (1, 128)    f32
    w2_ref: (128, 32)   compute dtype (BN1 affine folded in)
    b2_ref: (1, 32)     f32            (BN1 affine folded in)
    w3_ref: (1, 32)     f32            (BN2 affine folded in, stored as a row)
    b3_ref: (1, 1)      f32 in SMEM    (BN2 affine folded in)
    o_ref : (1, TM)     f32            lane-dense output row
    """
    # Cast x to the MXU operand dtype in VMEM (no HBM round trip).
    x = x_ref[...].astype(w1_ref.dtype)

    # Layer 1: Linear(dim, 128) -> ReLU   (f32 accumulate, f32 elementwise)
    h = jnp.dot(x, w1_ref[...], preferred_element_type=jnp.float32)
    h = jnp.maximum(h + b1_ref[...], 0.0)                        # (TM, 128) f32

    # Layer 2: (BN1-folded) Linear(128, 32) -> ReLU
    h = jnp.dot(h.astype(w2_ref.dtype), w2_ref[...],
                preferred_element_type=jnp.float32)
    h = jnp.maximum(h + b2_ref[...], 0.0)                        # (TM, 32) f32

    # Layer 3: (BN2-folded) Linear(32, 1) as a trans_b matmul: (1,32) x (TM,32)^T
    # -> (1, TM).  Result is lane-dense, so the store is an unmasked full-lane
    # vst; MXU utilisation is irrelevant here (kernel is HBM-bound).
    o = lax.dot_general(w3_ref[...], h,
                        dimension_numbers=(((1,), (1,)), ((), ())),
                        preferred_element_type=jnp.float32)       # (1, TM) f32
    o_ref[...] = (o + b3_ref[0, 0]).astype(o_ref.dtype)


def _round_down_align(v):
    return max(_ALIGN, (v // _ALIGN) * _ALIGN)


def _round_up_align(v):
    return max(_ALIGN, ((v + _ALIGN - 1) // _ALIGN) * _ALIGN)


def _vmem_capacity_bytes():
    """Per-core VMEM capacity; conservative 64 MiB (v7x) fallback."""
    try:
        info = pltpu.get_tpu_info()
        for name in ("vmem_capacity_bytes", "vmem_bytes", "vmem_size_bytes",
                     "vmem_capacity"):
            v = getattr(info, name, None)
            if v:
                return int(v)
    except Exception:
        pass
    return 64 * 1024 * 1024


def _estimate_vmem_per_row(dim, compute_itemsize):
    """Approximate VMEM bytes per tile row (pipeline buffers + intermediates)."""
    return (2 * dim * 4                # (tm, dim) f32 x tile, double-buffered
            + dim * compute_itemsize   # in-kernel cast of x to the MXU dtype
            + 128 * 4                  # (tm, 128) f32 h1
            + 128 * compute_itemsize   # h1 cast for the layer-2 matmul
            + 128 * 4                  # (tm, 32) f32 h2 (lane-padded)
            + 128 * 4                  # elementwise / matmul temporaries (slack)
            + 2 * 4)                   # (1, tm) f32 output block, double-buffered


def _pick_tile_m(n_rows, requested, per_row_bytes, tile_budget_bytes):
    """Largest 128-aligned row tile that fits the budget and keeps >=4 grid steps."""
    cap_vmem = _round_down_align(max(tile_budget_bytes, _ALIGN * per_row_bytes)
                                 // per_row_bytes)
    # >= 4 grid steps when N allows: each v7x TensorCore gets >= 2 pipelined
    # (double-buffered) iterations after the megacore split.
    cap_split = _round_up_align(-(-n_rows // 4))
    return max(_ALIGN, min(_round_down_align(requested), cap_vmem, cap_split))


def pixel_classifier_forward(x, folded_params, *, tile_m=2048,
                             compute_dtype=jnp.bfloat16,
                             vmem_limit_bytes=None):
    """x: (N, dim) float32.  Returns (N, 1) float32 (eval-mode BN semantics)."""
    w1, b1, w2, b2, w3row, b3 = folded_params
    N, dim = x.shape

    # x stays in its native f32 layout in HBM; the kernel casts to the MXU dtype.
    x = x.astype(jnp.float32)
    w1c = w1.astype(compute_dtype)
    w2c = w2.astype(compute_dtype)
    b1 = b1.astype(jnp.float32)
    b2 = b2.astype(jnp.float32)
    w3row = w3row.astype(jnp.float32)
    b3 = b3.astype(jnp.float32)

    # Generation-aware VMEM budget (v7x: 64 MiB/TC -> ~48 MiB limit; v5e/v6e:
    # 128 MiB -> ~96 MiB limit; always above v5e's 16 MiB scoped default).
    vmem_cap = _vmem_capacity_bytes()
    if vmem_limit_bytes is None:
        vmem_limit_bytes = max(32 * 1024 * 1024,
                               min((vmem_cap * 3) // 4, 112 * 1024 * 1024))

    # Resident weights are double-buffered by the pipeline even though their
    # block index never changes; account for them in the tile budget.
    weight_bytes = 2 * sum(int(a.size) * a.dtype.itemsize
                           for a in (w1c, b1, w2c, b2, w3row))
    per_row = _estimate_vmem_per_row(dim, jnp.dtype(compute_dtype).itemsize)
    tile_budget = vmem_limit_bytes - weight_bytes - 6 * 1024 * 1024  # headroom
    tm = _pick_tile_m(N, tile_m, per_row, tile_budget)

    num_tiles = pl.cdiv(N, tm)
    n_pad = num_tiles * tm   # output columns; last x block may be partial

    def resident(arr):
        # Whole (un-tiled) 2-D parameter resident in VMEM every grid step.
        return pl.BlockSpec(arr.shape, lambda i: (0, 0))

    out_rows = pl.pallas_call(
        _mlp_kernel,
        out_shape=jax.ShapeDtypeStruct((1, n_pad), jnp.float32),
        grid_spec=pltpu.PrefetchScalarGridSpec(
            num_scalar_prefetch=0,
            grid=(num_tiles,),
            in_specs=[
                pl.BlockSpec((tm, dim), lambda i: (i, 0)),           # x tile (f32)
                resident(w1c), resident(b1),
                resident(w2c), resident(b2),
                resident(w3row),
                pl.BlockSpec(memory_space=pltpu.MemorySpace.SMEM),   # b3 scalar
            ],
            out_specs=pl.BlockSpec((1, tm), lambda i: (0, i)),       # lane-dense
        ),
        compiler_params=pltpu.CompilerParams(
            dimension_semantics=("parallel",),
            vmem_limit_bytes=int(vmem_limit_bytes)),
    )(x, w1c, b1, w2c, b2, w3row, b3)

    # Tail entries of the last (partial) tile are garbage-fed and sliced away.
    return out_rows[0, :N][:, None]


def make_raw_params(key, dim):
    """Deterministic params mirroring the module's layer shapes.

    nn.Linear(in, out) weights are pre-transposed to (in, out) so the kernel
    does x @ W.  BatchNorm1d(F) is represented eval-mode (eps=1e-5) as a
    per-feature scale/shift."""
    ks = jax.random.split(key, 12)
    gain = 0.02  # matches init_weights(init_type='normal')

    def linear(kw, n_in, n_out):
        w = gain * jax.random.normal(kw, (n_in, n_out), jnp.float32)
        b = jnp.zeros((1, n_out), jnp.float32)
        return w, b

    def bn_fold(kg, kb, km, kv, feat):
        gamma = 1.0 + 0.1 * jax.random.normal(kg, (feat,), jnp.float32)
        beta = 0.1 * jax.random.normal(kb, (feat,), jnp.float32)
        mean = 0.1 * jax.random.normal(km, (feat,), jnp.float32)
        var = jnp.abs(1.0 + 0.1 * jax.random.normal(kv, (feat,), jnp.float32))
        eps = 1e-5
        scale = gamma / jnp.sqrt(var + eps)
        shift = beta - mean * scale
        return scale.reshape(1, feat), shift.reshape(1, feat)

    w1, b1 = linear(ks[0], dim, 128)
    s1, t1 = bn_fold(ks[1], ks[2], ks[3], ks[4], 128)
    w2, b2 = linear(ks[5], 128, 32)
    s2, t2 = bn_fold(ks[6], ks[7], ks[8], ks[9], 32)
    w3, b3 = linear(ks[10], 32, 1)
    return (w1, b1, s1, t1, w2, b2, s2, t2, w3, b3)


def fold_bn_into_linears(raw_params):
    """Exact (eval-mode) fold of the two BN affines into the following Linear."""
    (w1, b1, s1, t1, w2, b2, s2, t2, w3, b3) = raw_params
    w2f = s1.reshape(-1, 1) * w2                 # (128, 32)
    b2f = b2 + t1 @ w2                           # (1, 32)
    w3f = s2.reshape(-1, 1) * w3                 # (32, 1)
    b3f = b3 + t2 @ w3                           # (1, 1)
    w3row = w3f.reshape(1, -1)                   # (1, 32) row for the trans_b dot
    return (w1, b1, w2f, b2f, w3row, b3f)


def reference_raw(x, raw_params):
    """Straight port of the module forward (eval-mode BN), all float32."""
    (w1, b1, s1, t1, w2, b2, s2, t2, w3, b3) = raw_params
    h = jnp.maximum(x @ w1 + b1, 0.0) * s1 + t1
    h = jnp.maximum(h @ w2 + b2, 0.0) * s2 + t2
    return h @ w3 + b3


def reference_folded(x, folded_params):
    w1, b1, w2, b2, w3row, b3 = folded_params
    h = jnp.maximum(x @ w1 + b1, 0.0)
    h = jnp.maximum(h @ w2 + b2, 0.0)
    return jnp.sum(h * w3row, axis=-1, keepdims=True) + b3


def reference_matched(x, folded_params, compute_dtype):
    """Reference applying the same operand quantization the bf16 kernel does."""
    w1, b1, w2, b2, w3row, b3 = folded_params
    f32 = jnp.float32
    xq = x.astype(compute_dtype).astype(f32)
    w1q = w1.astype(compute_dtype).astype(f32)
    w2q = w2.astype(compute_dtype).astype(f32)
    h = jnp.maximum(xq @ w1q + b1, 0.0)
    h = h.astype(compute_dtype).astype(f32)
    h = jnp.maximum(h @ w2q + b2, 0.0)
    return jnp.sum(h * w3row, axis=-1, keepdims=True) + b3


if __name__ == "__main__":
    key = jax.random.PRNGKey(0)
    k_x, k_p = jax.random.split(key)

    dim = 128          # per-pixel feature dim; 128-multiple keeps the x DMA dense
    N = 300            # number of pixels; deliberately NOT a tile multiple

    x = jax.random.normal(k_x, (N, dim), jnp.float32)
    raw = make_raw_params(k_p, dim)
    folded = fold_bn_into_linears(raw)

    # Default (bf16 MXU) kernel.
    out = pixel_classifier_forward(x, folded)
    out = jax.block_until_ready(out)
    assert out.shape == (N, 1)

    # Float32 MXU kernel (module semantics without operand quantization).
    out_f32 = pixel_classifier_forward(x, folded, compute_dtype=jnp.float32)
    out_f32 = jax.block_until_ready(out_f32)
    assert out_f32.shape == (N, 1)

    with jax.default_matmul_precision("float32"):
        ref_raw = reference_raw(x, raw)
        ref_folded = reference_folded(x, folded)
        ref_matched = reference_matched(x, folded, jnp.bfloat16)

    # BN folding is mathematically exact (eval mode).
    assert jnp.allclose(ref_folded, ref_raw, atol=1e-5, rtol=1e-5), "fold mismatch"
    # f32 kernel matches the module forward.
    assert jnp.allclose(out_f32, ref_raw, atol=1e-3, rtol=1e-3), "f32 kernel mismatch"
    # bf16 kernel matches a quantization-matched f32 reference ...
    assert jnp.allclose(out, ref_matched, atol=1e-3, rtol=1e-2), "bf16 kernel mismatch"
    # ... and the full-f32 module forward loosely (bf16 operand rounding only).
    assert jnp.allclose(out, ref_raw, atol=5e-3, rtol=5e-2), "bf16 vs f32 drift"

    print("KERNEL_OK")
</pallas_src>

<mosaic_0001>
module attributes {stable_mosaic.version = 11 : i64} {
  func.func @_mlp_kernel(%arg0: i32, %arg1: memref<128x128xf32, #tpu.memory_space<vmem>>, %arg2: memref<128x128xbf16, #tpu.memory_space<vmem>>, %arg3: memref<1x128xf32, #tpu.memory_space<vmem>>, %arg4: memref<128x32xbf16, #tpu.memory_space<vmem>>, %arg5: memref<1x32xf32, #tpu.memory_space<vmem>>, %arg6: memref<1x32xf32, #tpu.memory_space<vmem>>, %arg7: memref<1x1xf32, #tpu.memory_space<smem>>, %arg8: memref<1x128xf32, #tpu.memory_space<vmem>>) attributes {dimension_semantics = [#tpu.dimension_semantics<parallel>], iteration_bounds = array<i64: 3>, scalar_prefetch = 0 : i64, scratch_operands = 0 : i64, tpu.core_type = #tpu.core_type<tc>, window_params = [{transform_indices = @transform_0, window_bounds = array<i64: 128, 128>}, {pipeline_mode = #tpu.pipeline_mode<synchronous>, transform_indices = @transform_1, window_bounds = array<i64: 128, 128>}, {pipeline_mode = #tpu.pipeline_mode<synchronous>, transform_indices = @transform_2, window_bounds = array<i64: 1, 128>}, {pipeline_mode = #tpu.pipeline_mode<synchronous>, transform_indices = @transform_3, window_bounds = array<i64: 128, 32>}, {pipeline_mode = #tpu.pipeline_mode<synchronous>, transform_indices = @transform_4, window_bounds = array<i64: 1, 32>}, {pipeline_mode = #tpu.pipeline_mode<synchronous>, transform_indices = @transform_5, window_bounds = array<i64: 1, 32>}, {transform_indices = @transform_6, window_bounds = array<i64: 1, 1>}, {transform_indices = @transform_7, window_bounds = array<i64: 1, 128>}]} {
    %c0 = arith.constant 0 : index
    %c0_0 = arith.constant 0 : index
    %0 = vector.load %arg1[%c0, %c0_0] : memref<128x128xf32, #tpu.memory_space<vmem>>, vector<128x128xf32>
    %1 = arith.truncf %0 : vector<128x128xf32> to vector<128x128xbf16>
    %c0_1 = arith.constant 0 : index
    %c0_2 = arith.constant 0 : index
    %2 = vector.load %arg2[%c0_1, %c0_2] : memref<128x128xbf16, #tpu.memory_space<vmem>>, vector<128x128xbf16>
    %cst = arith.constant dense<0.000000e+00> : vector<128x128xf32>
    %3 = tpu.matmul %1, %2, %cst {dimension_numbers = #tpu.dot_dimension_numbers<[1], [0], [0], [1], [0, 0, 1, 1], [], []>} : vector<128x128xbf16>, vector<128x128xbf16>, vector<128x128xf32> -> vector<128x128xf32>
    %c0_3 = arith.constant 0 : index
    %c0_4 = arith.constant 0 : index
    %4 = vector.load %arg3[%c0_3, %c0_4] : memref<1x128xf32, #tpu.memory_space<vmem>>, vector<1x128xf32>
    %5 = vector.broadcast %4 : vector<1x128xf32> to vector<128x128xf32>
    %6 = arith.addf %3, %5 : vector<128x128xf32>
    %cst_5 = arith.constant 0.000000e+00 : f32
    %7 = vector.broadcast %cst_5 : f32 to vector<128x128xf32>
    %8 = arith.maximumf %6, %7 : vector<128x128xf32>
    %9 = arith.truncf %8 : vector<128x128xf32> to vector<128x128xbf16>
    %c0_6 = arith.constant 0 : index
    %c0_7 = arith.constant 0 : index
    %10 = vector.load %arg4[%c0_6, %c0_7] : memref<128x32xbf16, #tpu.memory_space<vmem>>, vector<128x32xbf16>
    %cst_8 = arith.constant dense<0.000000e+00> : vector<128x32xf32>
    %11 = tpu.matmul %9, %10, %cst_8 {dimension_numbers = #tpu.dot_dimension_numbers<[1], [0], [0], [1], [0, 0, 1, 1], [], []>} : vector<128x128xbf16>, vector<128x32xbf16>, vector<128x32xf32> -> vector<128x32xf32>
    %c0_9 = arith.constant 0 : index
    %c0_10 = arith.constant 0 : index
    %12 = vector.load %arg5[%c0_9, %c0_10] : memref<1x32xf32, #tpu.memory_space<vmem>>, vector<1x32xf32>
    %13 = vector.broadcast %12 : vector<1x32xf32> to vector<128x32xf32>
    %14 = arith.addf %11, %13 : vector<128x32xf32>
    %cst_11 = arith.constant 0.000000e+00 : f32
    %15 = vector.broadcast %cst_11 : f32 to vector<128x32xf32>
    %16 = arith.maximumf %14, %15 : vector<128x32xf32>
    %c0_12 = arith.constant 0 : index
    %c0_13 = arith.constant 0 : index
    %17 = vector.load %arg6[%c0_12, %c0_13] : memref<1x32xf32, #tpu.memory_space<vmem>>, vector<1x32xf32>
    %cst_14 = arith.constant dense<0.000000e+00> : vector<1x128xf32>
    %18 = tpu.matmul %17, %16, %cst_14 {dimension_numbers = #tpu.dot_dimension_numbers<[1], [1], [0], [0], [0, 0, 1, 0], [], []>} : vector<1x32xf32>, vector<128x32xf32>, vector<1x128xf32> -> vector<1x128xf32>
    %c0_15 = arith.constant 0 : index
    %c0_16 = arith.constant 0 : index
    %19 = memref.load %arg7[%c0_15, %c0_16] : memref<1x1xf32, #tpu.memory_space<smem>>
    %20 = vector.broadcast %19 : f32 to vector<1x128xf32>
    %21 = arith.addf %18, %20 : vector<1x128xf32>
    %c0_17 = arith.constant 0 : index
    %c0_18 = arith.constant 0 : index
    %22 = vector.load %arg8[%c0_17, %c0_18] : memref<1x128xf32, #tpu.memory_space<vmem>>, vector<1x128xf32>
    tpu.vector_store %arg8[%c0_17, %c0_18], %21 {strides = array<i32>} : memref<1x128xf32, #tpu.memory_space<vmem>>, vector<1x128xf32>,
    return
  }
  func.func @transform_0(%arg0: i32) -> (i32, i32) {
    %c0_i32 = arith.constant 0 : i32
    %c0_i32_0 = arith.constant 0 : i32
    return %arg0, %c0_i32 : i32, i32
  }
  func.func @transform_1(%arg0: i32) -> (i32, i32) {
    %c0_i32 = arith.constant 0 : i32
    %c0_i32_0 = arith.constant 0 : i32
    %c0_i32_1 = arith.constant 0 : i32
    return %c0_i32, %c0_i32_0 : i32, i32
  }
  func.func @transform_2(%arg0: i32) -> (i32, i32) {
    %c0_i32 = arith.constant 0 : i32
    %c0_i32_0 = arith.constant 0 : i32
    %c0_i32_1 = arith.constant 0 : i32
    return %c0_i32, %c0_i32_0 : i32, i32
  }
  func.func @transform_3(%arg0: i32) -> (i32, i32) {
    %c0_i32 = arith.constant 0 : i32
    %c0_i32_0 = arith.constant 0 : i32
    %c0_i32_1 = arith.constant 0 : i32
    return %c0_i32, %c0_i32_0 : i32, i32
  }
  func.func @transform_4(%arg0: i32) -> (i32, i32) {
    %c0_i32 = arith.constant 0 : i32
    %c0_i32_0 = arith.constant 0 : i32
    %c0_i32_1 = arith.constant 0 : i32
    return %c0_i32, %c0_i32_0 : i32, i32
  }
  func.func @transform_5(%arg0: i32) -> (i32, i32) {
    %c0_i32 = arith.constant 0 : i32
    %c0_i32_0 = arith.constant 0 : i32
    %c0_i32_1 = arith.constant 0 : i32
    return %c0_i32, %c0_i32_0 : i32, i32
  }
  func.func @transform_6(%arg0: i32) -> (i32, i32) {
    %c0_i32 = arith.constant 0 : i32
    %c0_i32_0 = arith.constant 0 : i32
    %c0_i32_1 = arith.constant 0 : i32
    return %c0_i32, %c0_i32_0 : i32, i32
  }
  func.func @transform_7(%arg0: i32) -> (i32, i32) {
    %c0_i32 = arith.constant 0 : i32
    %c0_i32_0 = arith.constant 0 : i32
    return %c0_i32, %arg0 : i32, i32
  }
}

</mosaic_0001>

<bundles_post_ra>
// kernel: tpu_custom_call.1
= control target key start
LH: loop header
LB: loop body
LE: loop exit
PB: predicated region body
PF: predicated region fallthrough
CT: control target
= control target key end

     0   :  { %s1612_s0 = inlined_call_operand.hbm [shape: f32[300,128], index: 0, kind: input, shape index: {}]   ;;  %s1613_s1 = inlined_call_operand.vmem [shape: bf16[128,128], index: 1, kind: input, shape index: {}]   ;;  %s1614_s2 = inlined_call_operand.vmem [shape: f32[1,128], index: 2, kind: input, shape index: {}]   ;;  %s1615_s3 = inlined_call_operand.vmem [shape: bf16[128,32], index: 3, kind: input, shape index: {}]   ;;  %s1616_s4 = inlined_call_operand.vmem [shape: f32[1,32], index: 4, kind: input, shape index: {}]   ;;  %s1617_s5 = inlined_call_operand.vmem [shape: f32[1,32], index: 5, kind: input, shape index: {}]   ;;  %s1618_s6 = inlined_call_operand.<no memory space> [shape: f32[1,1], index: 6, kind: input, shape index: {}]   ;;  %s1619_s7 = inlined_call_operand.hbm [shape: f32[1,384], index: 7, kind: output, shape index: {}]  }
   0x1   :  { %12 = sst [smem:[#allocation2]] %s1618_s6 }
   0x2   :  { %13 = vsyncpa [#allocation4], 0 }
   0x3   :  { %15 = vsyncpa [#allocation4 + $0x1], 0 }
   0x4   :  { %16 = vsyncpa [#allocation5], 0 }
   0x5   :  { %18 = vsyncpa [#allocation5 + $0x1], 0  ;;  %s1352_s26 = smov 0   ;;  %s1354_s27 = smov 0  }
   0x6   :  { %s1356_s28 = smov 0   ;;  %s1358_s29 = smov 0  }
   0x7 LB: > { %s1373_s6 = sadd.s32 4294967295, %s1300_s29   ;;  %s914_s30 = sadd.s32 4294967294, %s1300_s29   ;;  %s1300_s29 = sphi %s1358_s29, %s1629_s29   ;;  %s1296_s28 = sphi %s1356_s28, %s1628_s28   ;;  %s1292_s27 = sphi %s1354_s27, %s1627_s27   ;;  %s1288_s26 = sphi %s1352_s26, %s1626_s26  }
   0x8   : > { %s1377_s8 = sadd.s32 1, %s1300_s29   ;;  %s31_s9 = sadd.s32 1, %s1296_s28 }
   0x9   : > { %s28_s10 = ssub.s32 %s1300_s29, %s1377_s8  ;;  %p38_p0 = scmp.ne.s32.totalorder %s1296_s28, %s1292_s27 }
   0xa   : > { %p29_p1 = scmp.eq.s32.totalorder %s28_s10, 0  ;;  %p39_p2 = scmp.eq.s32.totalorder %s1300_s29, 0 }
   0xb   : > { %p44_p3 = scmp.ne.s32.totalorder %s1292_s27, %s1288_s26  ;;  %p45_p4 = scmp.eq.s32.totalorder %s1373_s6, 0 }
   0xc   : > { %s1389_s11 = scalar_select %p29_p1, %s1296_s28, %s31_s9  }
   0xd   : > { %p40_p5 = por %p39_p2, %p38_p0  ;;  %p1391_p6 = por %p45_p4, %p44_p3 }
   0xe   : > { %p194_p7 = scmp.eq.s32.totalorder %s1373_s6, 2  ;;  %p200_p8 = scmp.eq.s32.totalorder %s914_s30, 2 }
   0xf   : > { %p916_p11 = scmp.ge.s32.totalorder %s1300_s29, 3 }
  0x10   : > { %p1396_p9 = por %p194_p7, %p38_p0  ;;  %p1400_p10 = por %p200_p8, %p44_p3 }
  0x11   : > { %234 = sbr.rel (%p916_p11) target bundleno = 59 (0x3b), region = 40 }
  0x12   : > { %s1622_s14 = scalar_select %p1400_p10, 1, 0 }
  0x18   : > { %237 = sbr.rel (!%p40_p5) target bundleno = 59 (0x3b), region = 44  ;;  %s238_s15 = sand.u32 (%p40_p5), 1, %s1296_s28  }
  0x19   : > { %s918_s16 = sshll.u32 (%p40_p5), %s1300_s29, 4  ;;  %s917_s17 = sshll.u32 (%p40_p5), %s238_s15, 7 }
  0x1a   : > { %s244_s18 = ssub.s32 (%p40_p5), 38, %s918_s16  ;;  %s1410_s21 = scalar_lea.sflag (%p40_p5), [#allocation4], %s238_s15 }
  0x1b   : > { %p245_p12 = scmp.lt.s32.totalorder (%p40_p5), %s244_s18, 16  ;;  %s242_s22 = scalar_lea.vmem (%p40_p5), [#allocation3], %s917_s17 }
  0x1f   : > { %s1631_s18 = smov (!%p245_p12, %s244_s18), 16 }
  0x20   : > { %s1407_s19 = sshll.u32 %s1631_s18, 7 }
  0x21   : > { %s249_s20 = ssub.s32 2048, %s1407_s19 }
  0x22   : > { %250 = vsyncadd %s1410_s21, %s249_s20  ;;  %p920_p13 = scmp.ne.s32.totalorder %s1407_s19, 0  ;;  %s964_s23 = sshll.u32 %s1300_s29, 11 }
  0x23   : > { %s1418_s30 = scalar_lea.hbm %s1612_s0, %s964_s23  ;;  %s255_s9 = sshll.u32 %s242_s22, 4  ;;  %s1420_s9 = int_to_ptr.vmem [resolvable:$true] %s255_s9 }
  0x24   : > { %s1206_s10 = scalar_lea.hbm %s1418_s30, %s1407_s19  ;;  %s1210_s17 = scalar_lea.hbm %s1612_s0, 4864 }
  0x25   : > { %p1207_p0 = scmp.ne.s32.totalorder %s1418_s30, %s1206_s10  ;;  %p1211_p3 = scmp.lt.u32.totalorder %s1418_s30, %s1612_s0 }
  0x26   : > { %p1212_p4 = scmp.lt.u32.totalorder %s1210_s17, %s1206_s10  ;;  %p1214_p7 = scmp.lt.u32.totalorder %s1206_s10, %s1418_s30 }
  0x27   : > { %p1208_p1 = pnand %p1207_p0, %p920_p13 }
  0x28   : > { %p1213_p5 = por %p1212_p4, %p1211_p3 }
  0x29   : > { %p1209_p2 = pneg %p1208_p1 }
  0x2a   : > { %p1215_p8 = por %p1214_p7, %p1213_p5 }
  0x2c   : > { %p1216_p11 = pnand %p1215_p8, %p1209_p2 }
  0x2e   : > { %1219 = shalt.err (!%p1216_p11)
}
  0x2f   : > { %s1220_s22 = scalar_lea.vmem %s1420_s9, %s1407_s19  ;;  %s1302_s23 = smov [#allocation3]  }
  0x30   : > { %p1221_p12 = scmp.ne.s32.totalorder %s1420_s9, %s1220_s22  ;;  %s1224_s24 = sshll.u32 %s1302_s23, 4  ;;  %s1225_s24 = int_to_ptr.vmem [resolvable:$false] %s1224_s24 }
  0x31   : > { %s1226_s25 = scalar_lea.vmem %s1225_s24, 4096  ;;  %p1227_p10 = scmp.lt.s32.totalorder %s1420_s9, %s1225_s24 }
  0x32   : > { %p1222_p0 = pnand %p1221_p12, %p920_p13  ;;  %p1228_p3 = scmp.lt.s32.totalorder %s1226_s25, %s1220_s22 }
  0x34   : > { %p1223_p1 = pneg %p1222_p0  ;;  %p1229_p4 = por %p1228_p3, %p1227_p10 }
  0x36   : > { %p1230_p5 = pnand %p1229_p4, %p1223_p1 }
  0x38   : > { %1233 = shalt.err (!%p1230_p5)
}
  0x39   : > { %s1303_s10 = smov 128   ;;  %s1304_s15 = smov 8  }
  0x3a   : > { %261 = dma.hbm_to_vmem [thread:$0]  (%p920_p13), %s1418_s30, %s1407_s19, %s1420_s9, %s1410_s21, %s1303_s10, %s1303_s10, %s1304_s15  }
  0x3b PF: > { %p924_p2 = scmp.ge.s32.totalorder %s1300_s29, 1  ;;  %p263_p7 = scmp.lt.s32.totalorder %s1300_s29, 4 }
  0x3d   : > { %p264_p8 = pnand %p924_p2, %p263_p7 }
  0x3e   : > { %s1450_s16 = sand.u32 (!%p264_p8), 1, %s1292_s27  }
  0x3f   : > { %267 = sbr.rel (%p264_p8) target bundleno = 838 (0x346), region = 48  ;;  %s925_s17 = sshll.u32 (!%p264_p8), %s1450_s16, 7 }
  0x40   : > { %s270_s18 = scalar_lea.sflag (!%p264_p8), [#allocation4], %s1450_s16  ;;  %s1454_s20 = scalar_lea.vmem (!%p264_p8), [#allocation3], %s925_s17 }
  0x46   : > { %1279 = dma.done.wait (%p1391_p6), %s270_s18, 2048  }
  0x47   : > { %1281 = vsyncadd (%p1391_p6), %s270_s18, 4294965248  ;;  %v1190_v0 = vld [vmem:[%s1613_s1] sm:$0xff]   ;;  %v1191_v1 = vld [vmem:[%s1613_s1 + $0x8] sm:$0xff]   ;;  %vm1306_vm0 = vmmov 0   ;;  %vm712_vm1 = vcmask 261120   ;;  %s710_s17 = sld [smem:[#allocation2]] }
  0x48   : > { %1014 = vmatprep.subr.bf16.mxu1 %v1190_v0  ;;  %v1192_v2 = vld [vmem:[%s1613_s1 + $0x10] sm:$0xff]   ;;  %v1193_v3 = vld [vmem:[%s1613_s1 + $0x18] sm:$0xff]   ;;  %v309_v4 = vld [vmem:[%s1454_s20] sm:$0xff]  ;;  %s961_s18 = sshll.u32 %s1373_s6, 4  ;;  %s302_s19 = scalar_lea.vmem [#allocation6], %s1450_s16 }
  0x49   : > { %1015 = vmatpush3.bf16.msra.mxu1 %v1190_v0  ;;  %v310_v5 = vld [vmem:[%s1454_s20 + $0x8] sm:$0xff]  ;;  %v1194_v7 = vld [vmem:[%s1613_s1 + $0x20] sm:$0xff]   ;;  %v1196_v9 = vld [vmem:[%s1613_s1 + $0x30] sm:$0xff]   ;;  %s848_s21 = sshll.u32 %s302_s19, 4  ;;  %s1569_s22 = scalar_lea.hbm %s1619_s7, %s961_s18  ;;  %s1571_s21 = int_to_ptr.vmem [resolvable:$true] %s848_s21 }
  0x4a   : > { %1016 = vmatprep.subr.bf16.mxu1 %v1191_v1  ;;  %v325_v6 = vpack.c.bf16 %v310_v5, %v309_v4  ;;  %v1195_v8 = vld [vmem:[%s1613_s1 + $0x28] sm:$0xff]   ;;  %v1197_v10 = vld [vmem:[%s1613_s1 + $0x38] sm:$0xff]   ;;  %v311_v11 = vld [vmem:[%s1454_s20 + $0x10] sm:$0xff]  ;;  %s836_s23 = scalar_lea.sflag [#allocation5], %s1450_s16  ;;  %s1234_s12 = scalar_lea.vmem %s1571_s21, 16 }
  0x4b   : > { %v312_v12 = vld [vmem:[%s1454_s20 + $0x18] sm:$0xff]  ;;  %v313_v13 = vld [vmem:[%s1454_s20 + $0x20] sm:$0xff]  ;;  %v314_v14 = vld [vmem:[%s1454_s20 + $0x28] sm:$0xff]  ;;  %p1235_p6 = scmp.ne.s32.totalorder %s1571_s21, %s1234_s12  ;;  %s1308_s6 = smov [#allocation6]  }
  0x4c   : > { %1030 = vmatprep.mubr.bf16.mxu1 %v325_v6  ;;  %v1198_v15 = vld [vmem:[%s1615_s3] sm:$0xff]   ;;  %v326_v16 = vpack.c.bf16 %v312_v12, %v311_v11  ;;  %v327_v17 = vpack.c.bf16 %v314_v14, %v313_v13  ;;  %v1199_v18 = vld [vmem:[%s1615_s3 + $0x8] sm:$0xff]   ;;  %v315_v19 = vld [vmem:[%s1454_s20 + $0x30] sm:$0xff]  ;;  %s1238_s24 = sshll.u32 %s1308_s6, 4  ;;  %s1239_s24 = int_to_ptr.vmem [resolvable:$false] %s1238_s24 }
  0x4d   : > { %1017 = vmatpush3.bf16.msra.mxu1 %v1191_v1  ;;  %v316_v20 = vld [vmem:[%s1454_s20 + $0x38] sm:$0xff]  ;;  %v317_v21 = vld [vmem:[%s1454_s20 + $0x40] sm:$0xff]  ;;  %v318_v22 = vld [vmem:[%s1454_s20 + $0x48] sm:$0xff]  ;;  %p1236_p10 = pnand %p1235_p6, %p1396_p9  ;;  %p1241_p11 = scmp.lt.s32.totalorder %s1571_s21, %s1239_s24 }
  0x4e   : > { %1018 = vmatprep.subr.bf16.mxu1 %v1192_v2  ;;  %v1200_v23 = vld [vmem:[%s1615_s3 + $0x10] sm:$0xff]   ;;  %v328_v24 = vpack.c.bf16 %v316_v20, %v315_v19  ;;  %v329_v25 = vpack.c.bf16 %v318_v22, %v317_v21  ;;  %v1201_v26 = vld [vmem:[%s1615_s3 + $0x18] sm:$0xff]   ;;  %v321_v29 = vld [vmem:[%s1454_s20 + $0x60] sm:$0xff] }
  0x4f   : > { %v319_v27 = vld [vmem:[%s1454_s20 + $0x50] sm:$0xff]  ;;  %v320_v28 = vld [vmem:[%s1454_s20 + $0x58] sm:$0xff]  ;;  %v322_v30 = vld [vmem:[%s1454_s20 + $0x68] sm:$0xff]  ;;  %p1237_p13 = pneg %p1236_p10 }
  0x50   : > { %v1202_v31 = vld [vmem:[%s1615_s3 + $0x20] sm:$0xff]   ;;  %v330_v32 = vpack.c.bf16 %v320_v28, %v319_v27  ;;  %v331_v33 = vpack.c.bf16 %v322_v30, %v321_v29  ;;  %v1203_v34 = vld [vmem:[%s1615_s3 + $0x28] sm:$0xff]   ;;  %v323_v35 = vld [vmem:[%s1454_s20 + $0x70] sm:$0xff] }
  0x51   : > { %1019 = vmatpush3.bf16.msra.mxu1 %v1192_v2  ;;  %v324_v36 = vld [vmem:[%s1454_s20 + $0x78] sm:$0xff]  ;;  %v1204_v38 = vld [vmem:[%s1615_s3 + $0x30] sm:$0xff]   ;;  %v926_v40 = vld [vmem:[%s1614_s2] ss:$0 sm:$0xff]  ;;  %s1240_s20 = scalar_lea.vmem %s1239_s24, 32 }
  0x52   : > { %1020 = vmatprep.subr.bf16.mxu1 %v1193_v3  ;;  %v332_v37 = vpack.c.bf16 %v324_v36, %v323_v35  ;;  %v1205_v39 = vld [vmem:[%s1615_s3 + $0x38] sm:$0xff]   ;;  %v935_v35 = vld [vmem:[%s1616_s4] ss:$0 sm:$0xff]  ;;  %vm1533_vm2 = vmpackc.low %vm712_vm1, %vm712_vm1  ;;  %p1242_p12 = scmp.lt.s32.totalorder %s1240_s20, %s1234_s12 }
  0x54   : > { %p1243_p0 = por %p1242_p12, %p1241_p11 }
  0x55   : > { %1021 = vmatpush3.bf16.msra.mxu1 %v1193_v3 }
  0x56   : > { %1022 = vmatprep.subr.bf16.mxu1 %v1194_v7  ;;  %p1244_p1 = pnand %p1243_p0, %p1237_p13 }
  0x59   : > { %1023 = vmatpush3.bf16.msra.mxu1 %v1194_v7 }
  0x5a   : > { %1024 = vmatprep.subr.bf16.mxu1 %v1195_v8 }
  0x5d   : > { %1025 = vmatpush3.bf16.msra.mxu1 %v1195_v8 }
  0x5e   : > { %1026 = vmatprep.subr.bf16.mxu1 %v1196_v9 }
  0x61   : > { %1027 = vmatpush3.bf16.msra.mxu1 %v1196_v9 }
  0x62   : > { %1028 = vmatprep.subr.bf16.mxu1 %v1197_v10 }
  0x65   : > { %1029 = vmatpush3.bf16.msra.mxu1 %v1197_v10 }
  0x66   : > { %1046 = vmatprep.subr.bf16.mxu1 %v1198_v15 }
  0x68   : > { %1031 = vmatmul.mubr.bf16.vlgmr.msra.gmra.mrb[0].mxu1 %v326_v16 }
  0x69   : > { %1034 = vmatprep.mubr.bf16.mxu1 %v327_v17  ;;  %1047 = vmatpush3.bf16.msra.mxu1 %v1198_v15 }
  0x6a   : > { %1048 = vmatprep.subr.bf16.mxu1 %v1199_v18 }
  0x6d   : > { %1049 = vmatpush3.bf16.msra.mxu1 %v1199_v18 }
  0x6e   : > { %1050 = vmatprep.subr.bf16.mxu1 %v1200_v23 }
  0x70   : > { %1035 = vmatmul.mubr.bf16.gmra.mrb[4].mxu1 %v328_v24 }
  0x71   : > { %1038 = vmatprep.mubr.bf16.mxu1 %v329_v25  ;;  %1051 = vmatpush3.bf16.msra.mxu1 %v1200_v23 }
  0x72   : > { %1052 = vmatprep.subr.bf16.mxu1 %v1201_v26 }
  0x75   : > { %1053 = vmatpush3.bf16.msra.mxu1 %v1201_v26 }
  0x76   : > { %1054 = vmatprep.subr.bf16.mxu1 %v1202_v31 }
  0x78   : > { %1039 = vmatmul.mubr.bf16.gmra.mrb[8].mxu1 %v330_v32 }
  0x79   : > { %1042 = vmatprep.mubr.bf16.mxu1 %v331_v33  ;;  %1055 = vmatpush3.bf16.msra.mxu1 %v1202_v31  ;;  %v1305_v33 = vmov 0.0|0.0  }
  0x7a   : > { %1056 = vmatprep.subr.bf16.mxu1 %v1203_v34  ;;  %1113 = vmatprep.subr.bf16.mxu0 %v1305_v33 }
  0x7d   : > { %1057 = vmatpush3.bf16.msra.mxu1 %v1203_v34  ;;  %v1307_v34 = vmov 0.0  }
  0x7e   : > { %1058 = vmatprep.subr.bf16.mxu1 %v1204_v38  ;;  %1110 = vmatprep.mubr.msk.f32.mxu0 %vm1306_vm0, %v1307_v34 }
  0x80   : > { %1043 = vmatmul.mubr.bf16.gmra.mrb[12].mxu1 %v332_v37 }
  0x81   : > { %1059 = vmatpush3.bf16.msra.mxu1 %v1204_v38 }
  0x82   : > { %1060 = vmatprep.subr.bf16.mxu1 %v1205_v39 }
  0x85   : > { %1061 = vmatpush3.bf16.msra.mxu1 %v1205_v39 }
 0x13b   : > { %v1032_v41 = vpop.f32.mrb[0].mxu1 }
 0x13c   : > { %v447_v42 = vadd.f32 %v1032_v41, %v926_v40  ;;  %v438_v43 = vpop.f32.mrb[1].mxu1 }
 0x13d   : > { %v439_v44 = vadd.f32 %v926_v40, %v438_v43  ;;  %v1033_v45 = vpop.f32.mrb[2].mxu1 }
 0x13e   : > { %v450_v46 = vadd.f32 %v1033_v45, %v926_v40  ;;  %v441_v47 = vpop.f32.mrb[3].mxu1  ;;  %v503_v49 = vmax.f32 %v447_v42, 0.0 }
 0x13f   : > { %v442_v48 = vadd.f32 %v926_v40, %v441_v47  ;;  %v501_v51 = vmax.f32 %v439_v44, 0.0 }
 0x140   : > { %v504_v50 = vmax.f32 %v450_v46, 0.0 }
 0x141   : > { %v502_v52 = vmax.f32 %v442_v48, 0.0 }
 0x142   : > { %v518_v53 = vpack.c.bf16 %v504_v50, %v503_v49 }
 0x143   : > { %v517_v54 = vpack.c.bf16 %v502_v52, %v501_v51  ;;  %v1036_v55 = vpop.f32.mrb[4].mxu1 }
 0x144   : > { %v463_v56 = vadd.f32 %v1036_v55, %v926_v40  ;;  %v454_v57 = vpop.f32.mrb[5].mxu1 }
 0x145   : > { %v455_v58 = vadd.f32 %v926_v40, %v454_v57  ;;  %1062 = vmatprep.mubr.bf16.mxu1 %v517_v54  ;;  %v1037_v59 = vpop.f32.mrb[6].mxu1 }
 0x146   : > { %v507_v60 = vmax.f32 %v463_v56, 0.0  ;;  %v466_v61 = vadd.f32 %v1037_v59, %v926_v40  ;;  %1063 = vmatmul.mubr.bf16.vlgmr.msra.gmra.mrb[16].mxu1 %v518_v53  ;;  %v457_v62 = vpop.f32.mrb[7].mxu1 }
 0x147   : > { %v505_v63 = vmax.f32 %v455_v58, 0.0  ;;  %v458_v0 = vadd.f32 %v926_v40, %v457_v62 }
 0x148   : > { %v508_v1 = vmax.f32 %v466_v61, 0.0 }
 0x149   : > { %v506_v2 = vmax.f32 %v458_v0, 0.0 }
 0x14a   : > { %v520_v3 = vpack.c.bf16 %v508_v1, %v507_v60 }
 0x14b   : > { %v519_v4 = vpack.c.bf16 %v506_v2, %v505_v63  ;;  %v1040_v5 = vpop.f32.mrb[8].mxu1 }
 0x14c   : > { %v479_v6 = vadd.f32 %v1040_v5, %v926_v40  ;;  %v470_v7 = vpop.f32.mrb[9].mxu1 }
 0x14d   : > { %1066 = vmatprep.mubr.bf16.mxu1 %v519_v4  ;;  %v471_v8 = vadd.f32 %v926_v40, %v470_v7  ;;  %v1041_v9 = vpop.f32.mrb[10].mxu1 }
 0x14e   : > { %1067 = vmatmul.mubr.bf16.gmra.mrb[20].mxu1 %v520_v3  ;;  %v511_v10 = vmax.f32 %v479_v6, 0.0  ;;  %v482_v11 = vadd.f32 %v1041_v9, %v926_v40  ;;  %v473_v12 = vpop.f32.mrb[11].mxu1 }
 0x14f   : > { %v509_v13 = vmax.f32 %v471_v8, 0.0  ;;  %v474_v14 = vadd.f32 %v926_v40, %v473_v12 }
 0x150   : > { %v512_v15 = vmax.f32 %v482_v11, 0.0 }
 0x151   : > { %v510_v16 = vmax.f32 %v474_v14, 0.0 }
 0x152   : > { %v522_v17 = vpack.c.bf16 %v512_v15, %v511_v10 }
 0x153   : > { %v521_v18 = vpack.c.bf16 %v510_v16, %v509_v13  ;;  %v1044_v19 = vpop.f32.mrb[12].mxu1 }
 0x154   : > { %v495_v20 = vadd.f32 %v1044_v19, %v926_v40  ;;  %v486_v21 = vpop.f32.mrb[13].mxu1 }
 0x155   : > { %1070 = vmatprep.mubr.bf16.mxu1 %v521_v18  ;;  %v487_v22 = vadd.f32 %v926_v40, %v486_v21  ;;  %v1045_v23 = vpop.f32.mrb[14].mxu1 }
 0x156   : > { %1071 = vmatmul.mubr.bf16.gmra.mrb[24].mxu1 %v522_v17  ;;  %v515_v24 = vmax.f32 %v495_v20, 0.0  ;;  %v498_v25 = vadd.f32 %v1045_v23, %v926_v40  ;;  %v489_v26 = vpop.f32.mrb[15].mxu1 }
 0x157   : > { %v513_v27 = vmax.f32 %v487_v22, 0.0  ;;  %v490_v28 = vadd.f32 %v926_v40, %v489_v26 }
 0x158   : > { %v516_v29 = vmax.f32 %v498_v25, 0.0 }
 0x159   : > { %v514_v30 = vmax.f32 %v490_v28, 0.0 }
 0x15a   : > { %v524_v31 = vpack.c.bf16 %v516_v29, %v515_v24  ;;  %v709_v29 = vld [vmem:[%s1617_s5] sm:$0x1] }
 0x15b   : > { %v523_v32 = vpack.c.bf16 %v514_v30, %v513_v27  ;;  %v711_v30 = vstv %s710_s17 }
 0x15d   : > { %1074 = vmatprep.mubr.bf16.mxu1 %v523_v32 }
 0x15e   : > { %1075 = vmatmul.mubr.bf16.gmra.mrb[28].mxu1 %v524_v31 }
 0x219   : > { %v1064_v36 = vpop.f32.mrb[16].mxu1 }
 0x21a   : > { %v639_v37 = vadd.f32 %v1064_v36, %v935_v35  ;;  %v630_v38 = vpop.f32.mrb[17].mxu1 }
 0x21b   : > { %v631_v39 = vadd.f32 %v935_v35, %v630_v38  ;;  %v1065_v40 = vpop.f32.mrb[18].mxu1 }
 0x21c   : > { %v642_v41 = vadd.f32 %v1065_v40, %v935_v35  ;;  %v633_v42 = vpop.f32.mrb[19].mxu1  ;;  %v695_v44 = vmax.f32 %v639_v37, 0.0 }
 0x21d   : > { %v634_v43 = vadd.f32 %v935_v35, %v633_v42  ;;  %v693_v46 = vmax.f32 %v631_v39, 0.0 }
 0x21e   : > { %v696_v45 = vmax.f32 %v642_v41, 0.0 }
 0x21f   : > { %v694_v47 = vmax.f32 %v634_v43, 0.0 }
 0x220   : > { %v1118_v48 = vpack.c.bf16 %v696_v45, %v695_v44 }
 0x221   : > { %v1114_v50 = vpack.c.bf16 %v694_v47, %v693_v46  ;;  %v1068_v51 = vpop.f32.mrb[20].mxu1 }
 0x222   : > { %v655_v52 = vadd.f32 %v1068_v51, %v935_v35  ;;  %v646_v53 = vpop.f32.mrb[21].mxu1 }
 0x223   : > { %v647_v54 = vadd.f32 %v935_v35, %v646_v53  ;;  %1116 = vmatpush3.bf16.xpose.msk.msra.mxu0 %vm1533_vm2, %v1114_v50  ;;  %v1069_v55 = vpop.f32.mrb[22].mxu1 }
 0x224   : > { %v699_v56 = vmax.f32 %v655_v52, 0.0  ;;  %v658_v57 = vadd.f32 %v1069_v55, %v935_v35  ;;  %v649_v58 = vpop.f32.mrb[23].mxu1  ;;  %1117 = vmatprep.subr.bf16.mxu0 %v1305_v33 }
 0x225   : > { %v697_v59 = vmax.f32 %v647_v54, 0.0  ;;  %v650_v60 = vadd.f32 %v935_v35, %v649_v58 }
 0x226   : > { %v700_v61 = vmax.f32 %v658_v57, 0.0 }
 0x227   : > { %v698_v62 = vmax.f32 %v650_v60, 0.0 }
 0x228   : > { %v1126_v63 = vpack.c.bf16 %v700_v61, %v699_v56 }
 0x229   : > { %v1122_v0 = vpack.c.bf16 %v698_v62, %v697_v59  ;;  %v1072_v1 = vpop.f32.mrb[24].mxu1 }
 0x22a   : > { %v671_v2 = vadd.f32 %v1072_v1, %v935_v35  ;;  %v662_v3 = vpop.f32.mrb[25].mxu1 }
 0x22b   : > { %1120 = vmatpush3.bf16.xpose.msk.msra.mxu0 %vm1533_vm2, %v1118_v48  ;;  %v663_v4 = vadd.f32 %v935_v35, %v662_v3  ;;  %v1073_v5 = vpop.f32.mrb[26].mxu1 }
 0x22c   : > { %v703_v6 = vmax.f32 %v671_v2, 0.0  ;;  %1121 = vmatprep.subr.bf16.mxu0 %v1305_v33  ;;  %v674_v7 = vadd.f32 %v1073_v5, %v935_v35  ;;  %v665_v8 = vpop.f32.mrb[27].mxu1 }
 0x22d   : > { %v701_v9 = vmax.f32 %v663_v4, 0.0  ;;  %v666_v10 = vadd.f32 %v935_v35, %v665_v8 }
 0x22e   : > { %v704_v11 = vmax.f32 %v674_v7, 0.0 }
 0x22f   : > { %v702_v12 = vmax.f32 %v666_v10, 0.0 }
 0x230   : > { %v1134_v13 = vpack.c.bf16 %v704_v11, %v703_v6 }
 0x231   : > { %v1130_v14 = vpack.c.bf16 %v702_v12, %v701_v9  ;;  %v1076_v15 = vpop.f32.mrb[28].mxu1 }
 0x232   : > { %v687_v16 = vadd.f32 %v1076_v15, %v935_v35  ;;  %v678_v17 = vpop.f32.mrb[29].mxu1 }
 0x233   : > { %1124 = vmatpush3.bf16.xpose.msk.msra.mxu0 %vm1533_vm2, %v1122_v0  ;;  %v679_v18 = vadd.f32 %v935_v35, %v678_v17  ;;  %v1077_v19 = vpop.f32.mrb[30].mxu1 }
 0x234   : > { %1125 = vmatprep.subr.bf16.mxu0 %v1305_v33  ;;  %v707_v20 = vmax.f32 %v687_v16, 0.0  ;;  %v690_v21 = vadd.f32 %v1077_v19, %v935_v35  ;;  %v681_v22 = vpop.f32.mrb[31].mxu1 }
 0x235   : > { %v705_v23 = vmax.f32 %v679_v18, 0.0  ;;  %v682_v24 = vadd.f32 %v935_v35, %v681_v22 }
 0x236   : > { %v708_v25 = vmax.f32 %v690_v21, 0.0 }
 0x237   : > { %v706_v26 = vmax.f32 %v682_v24, 0.0 }
 0x238   : > { %v1142_v27 = vpack.c.bf16 %v708_v25, %v707_v20 }
 0x239   : > { %v1138_v28 = vpack.c.bf16 %v706_v26, %v705_v23 }
 0x23b   : > { %1128 = vmatpush3.bf16.xpose.msk.msra.mxu0 %vm1533_vm2, %v1126_v63 }
 0x23c   : > { %1129 = vmatprep.subr.bf16.mxu0 %v1305_v33 }
 0x243   : > { %1132 = vmatpush3.bf16.xpose.msk.msra.mxu0 %vm1533_vm2, %v1130_v14 }
 0x244   : > { %1133 = vmatprep.subr.bf16.mxu0 %v1305_v33 }
 0x24b   : > { %1136 = vmatpush3.bf16.xpose.msk.msra.mxu0 %vm1533_vm2, %v1134_v13 }
 0x24c   : > { %1137 = vmatprep.subr.bf16.mxu0 %v1305_v33 }
 0x253   : > { %1140 = vmatpush3.bf16.xpose.msk.msra.mxu0 %vm1533_vm2, %v1138_v28 }
 0x254   : > { %1141 = vmatprep.subr.bf16.mxu0 %v1305_v33 }
 0x25b   : > { %1144 = vmatpush3.bf16.xpose.msk.msra.mxu0 %vm1533_vm2, %v1142_v27 }
 0x262   : > { %1111 = vmatmul.mubr.msk.f32.vlgmr.msra.gmra.mrb[0].mxu0 %vm712_vm1, %v709_v29 }
 0x335   : > { %v830_v31 = vpop.f32.mrb[0].mxu0 }
 0x336   : > { %v831_v32 = vadd.f32 %v830_v31, %v711_v30  ;;  %v1112_v34 = vpop.f32.mrb[1].mxu0 }
 0x338   : > { %834 = vst [vmem:[%s302_s19] sm:$0x1] %v831_v32 }
 0x339   : > { %1247 = shalt.err (!%p1244_p1)
}
 0x33a   : > { %s1248_s16 = scalar_lea.hbm %s1569_s22, 16  ;;  %s1252_s15 = scalar_lea.hbm %s1619_s7, 48 }
 0x33b   : > { %p1249_p3 = scmp.ne.s32.totalorder %s1569_s22, %s1248_s16  ;;  %p1253_p2 = scmp.lt.u32.totalorder %s1569_s22, %s1619_s7 }
 0x33c   : > { %p1254_p7 = scmp.lt.u32.totalorder %s1252_s15, %s1248_s16  ;;  %p1256_p6 = scmp.lt.u32.totalorder %s1248_s16, %s1569_s22 }
 0x33d   : > { %p1250_p4 = pnand %p1249_p3, %p1396_p9 }
 0x33e   : > { %p1255_p8 = por %p1254_p7, %p1253_p2 }
 0x33f   : > { %p1251_p5 = pneg %p1250_p4 }
 0x340   : > { %p1257_p10 = por %p1256_p6, %p1255_p8 }
 0x342   : > { %p1258_p13 = pnand %p1257_p10, %p1251_p5 }
 0x344   : > { %1261 = shalt.err (!%p1258_p13)
}
 0x345   : > { %1146 = dma.vmem_to_hbm [thread:$0]  (%p1396_p9), %s1571_s21, 16, %s1569_s22, %s836_s23  }
 0x346 PF: > { %p1152_p11 = scmp.ge.s32.totalorder %s1300_s29, 2  ;;  %s860_s19 = sand.u32 1, %s1288_s26  }
 0x347   : > { %p1625_p12 = scmp.ne.s32.totalorder %s1622_s14, 0  ;;  %s861_s30 = scalar_lea.sflag [#allocation5], %s860_s19 }
 0x349   : > { %p1149_p0 = pnand %p1152_p11, %p1625_p12 }
 0x34b   : > { %1283 = dma.done.wait (!%p1149_p0), %s861_s30, 16  }
 0x34c   : > { %1285 = vsyncadd (!%p1149_p0), %s861_s30, 4294967280  ;;  %p21_p1 = scmp.ge.s32.totalorder %s1377_s8, 5   ;;  %s1626_s26 = smov %s1292_s27 }
 0x34d   : > { %s1627_s27 = smov %s1296_s28  ;;  %s1628_s28 = smov %s1389_s11 }
 0x34e   : > { %s1629_s29 = smov %s1377_s8  ;;  %23 = sbr.rel (!%p21_p1) target bundleno = 7 (0x7), region = 93 }
 0x355   :  { %865 = vsyncpa [#allocation4], 1 }
 0x356   :  { %867 = vsyncpa [#allocation4 + $0x1], 1 }
 0x357   :  { %868 = vsyncpa [#allocation5], 1 }
 0x358   :  { %870 = vsyncpa [#allocation5 + $0x1], 1 }

</bundles_post_ra>
